<compile_context>
chip_gen: v6e
topology: v6e:2x2x1
jax: 0.10.0
libtpu: 0.0.40
codegen_flags: <defaults>
</compile_context>

<pallas_src>
import jax
import jax.numpy as jnp
from jax.experimental import pallas as pl
from jax.experimental.pallas import tpu as pltpu


def _routed_linear_kernel(t_ref, perm_ref, x_ref, w_ref, b_ref, o_ref):
    # t_ref, perm_ref : SMEM (B,) int32  -- only used by the index_maps
    # x_ref : VMEM (1, Fb, 128)      -- this sample's features (lane-dense)
    # w_ref : VMEM (1, D, Fb, 128)   -- routed layer's weights (lane-dense)
    # b_ref : VMEM (1, D, 1)         -- routed layer's bias
    # o_ref : VMEM (1, D, 1)
    del t_ref, perm_ref  # routing handled entirely in the index_maps
    x = x_ref[...]                                  # (1, Fb, 128)
    w = w_ref[0]                                    # (D, Fb, 128)
    prod = x * w                                    # VPU, broadcast over D
    col = jnp.sum(prod, axis=1)                     # (D, 128) sublane reduce
    s = jnp.sum(col, axis=-1, keepdims=True)        # (D, 1)   lane reduce
    o_ref[0] = s + b_ref[0]


def routed_linear(x, t, weights, biases):
    """out[i] = x[i].flatten() @ weights[t[i]-1].T + biases[t[i]-1]

    x       : (B, ...) float, flattens to (B, F)
    t       : (B,) int, 1-based layer index in [1, L]
    weights : (L, D, F) float32   (PyTorch nn.Linear weight layout)
    biases  : (L, D)    float32
    returns : (B, D)    float32
    """
    B = x.shape[0]
    xf = x.reshape(B, -1).astype(jnp.float32)            # (B, F)
    F = xf.shape[-1]
    L, D, Fw = weights.shape
    assert Fw == F, f"weight feature dim {Fw} != flattened input dim {F}"

    # Pad F to a lane multiple (zero padding contributes nothing to the sums).
    pad = (-F) % 128
    if pad:
        xf = jnp.pad(xf, ((0, 0), (0, pad)))
        weights = jnp.pad(weights, ((0, 0), (0, 0), (0, pad)))
    Fp = F + pad
    Fb = Fp // 128

    xr = xf.reshape(B, Fb, 128)                                   # (B, Fb, 128)
    wr = weights.astype(jnp.float32).reshape(L, D, Fb, 128)       # (L, D, Fb, 128)
    br = biases.astype(jnp.float32).reshape(L, D, 1)              # (L, D, 1)

    t_idx = jnp.clip(t.astype(jnp.int32) - 1, 0, L - 1)           # (B,)
    perm = jnp.argsort(t_idx).astype(jnp.int32)                   # sorted visit order

    grid_spec = pltpu.PrefetchScalarGridSpec(
        num_scalar_prefetch=2,
        grid=(B,),
        in_specs=[
            # x[perm[i]] tile (full F, lane-dense)
            pl.BlockSpec((1, Fb, 128), lambda i, ts, pm: (pm[i], 0, 0)),
            # W[t[perm[i]]] tile -- equal consecutive indices dedup the DMA
            pl.BlockSpec((1, D, Fb, 128), lambda i, ts, pm: (ts[pm[i]], 0, 0, 0)),
            # bias[t[perm[i]]]
            pl.BlockSpec((1, D, 1), lambda i, ts, pm: (ts[pm[i]], 0, 0)),
        ],
        out_specs=pl.BlockSpec((1, D, 1), lambda i, ts, pm: (pm[i], 0, 0)),
    )

    out = pl.pallas_call(
        _routed_linear_kernel,
        out_shape=jax.ShapeDtypeStruct((B, D, 1), jnp.float32),
        grid_spec=grid_spec,
        compiler_params=pltpu.CompilerParams(
            dimension_semantics=("parallel",),
            vmem_limit_bytes=32 * 1024 * 1024,
        ),
    )(t_idx, perm, xr, wr, br)
    return out.reshape(B, D)


if __name__ == "__main__":
    # Small shapes consistent with the module's forward:
    # original flattens x of shape (B, 2, 1280, 8, 8) -> F = 163840.
    # Here channels 1280 -> 8, so F = 2*8*8*8 = 1024 (divisible by 128).
    B, C, H, W = 4, 8, 8, 8
    F = 2 * C * H * W            # 1024
    L, D = 48, 2

    key = jax.random.PRNGKey(0)
    kx, kt, kw, kb = jax.random.split(key, 4)

    x = jax.random.normal(kx, (B, 2, C, H, W), dtype=jnp.float32)
    t = jax.random.randint(kt, (B,), 1, L + 1, dtype=jnp.int32)   # 1-based in [1, L]

    # PyTorch-Linear-style uniform init, PyTorch (L, D, F) weight layout.
    bound = 1.0 / (F ** 0.5)
    weights = jax.random.uniform(kw, (L, D, F), jnp.float32, -bound, bound)
    biases = jax.random.uniform(kb, (L, D), jnp.float32, -bound, bound)

    out = jax.block_until_ready(routed_linear(x, t, weights, biases))

    # Pure-JAX reference of the PyTorch forward semantics.
    xf = x.reshape(B, -1)
    t_idx = t - 1
    ref = jnp.stack(
        [xf[i] @ weights[t_idx[i]].T + biases[t_idx[i]] for i in range(B)]
    )

    assert out.shape == (B, D)
    err = float(jnp.max(jnp.abs(out - ref)))
    assert jnp.allclose(out, ref, atol=2e-4, rtol=2e-4), f"max abs err {err}"
    print("KERNEL_OK")
</pallas_src>

<mosaic_0001>
module attributes {stable_mosaic.version = 11 : i64} {
  func.func @_routed_linear_kernel(%arg0: i32, %arg1: memref<4xi32, #tpu.memory_space<smem>>, %arg2: memref<4xi32, #tpu.memory_space<smem>>, %arg3: memref<1x8x128xf32, #tpu.memory_space<vmem>>, %arg4: memref<1x2x8x128xf32, #tpu.memory_space<vmem>>, %arg5: memref<1x2x1xf32, #tpu.memory_space<vmem>>, %arg6: memref<1x2x1xf32, #tpu.memory_space<vmem>>) attributes {dimension_semantics = [#tpu.dimension_semantics<parallel>], iteration_bounds = array<i64: 4>, scalar_prefetch = 2 : i64, scratch_operands = 0 : i64, tpu.core_type = #tpu.core_type<tc>, window_params = [{transform_indices = @transform_0, window_bounds = array<i64: 1, 8, 128>}, {transform_indices = @transform_1, window_bounds = array<i64: 1, 2, 8, 128>}, {transform_indices = @transform_2, window_bounds = array<i64: 1, 2, 1>}, {transform_indices = @transform_3, window_bounds = array<i64: 1, 2, 1>}]} {
    %c0 = arith.constant 0 : index
    %c0_0 = arith.constant 0 : index
    %c0_1 = arith.constant 0 : index
    %0 = vector.load %arg3[%c0, %c0_0, %c0_1] : memref<1x8x128xf32, #tpu.memory_space<vmem>>, vector<1x8x128xf32>
    %c0_2 = arith.constant 0 : index
    %c0_3 = arith.constant 0 : index
    %c0_4 = arith.constant 0 : index
    %c0_5 = arith.constant 0 : index
    %1 = vector.load %arg4[%c0_2, %c0_3, %c0_4, %c0_5] : memref<1x2x8x128xf32, #tpu.memory_space<vmem>>, vector<1x2x8x128xf32>
    %2 = vector.shape_cast %1 : vector<1x2x8x128xf32> to vector<2x8x128xf32>
    %3 = vector.broadcast %0 : vector<1x8x128xf32> to vector<2x8x128xf32>
    %4 = arith.mulf %3, %2 : vector<2x8x128xf32>
    %cst = arith.constant dense<0.000000e+00> : vector<2x128xf32>
    %5 = vector.multi_reduction <add>, %4, %cst [1] : vector<2x8x128xf32> to vector<2x128xf32>
    %cst_6 = arith.constant dense<0.000000e+00> : vector<2xf32>
    %6 = vector.multi_reduction <add>, %5, %cst_6 [1] : vector<2x128xf32> to vector<2xf32>
    %7 = vector.shape_cast %6 : vector<2xf32> to vector<2x1xf32>
    %c0_7 = arith.constant 0 : index
    %c0_8 = arith.constant 0 : index
    %c0_9 = arith.constant 0 : index
    %8 = vector.load %arg5[%c0_7, %c0_8, %c0_9] : memref<1x2x1xf32, #tpu.memory_space<vmem>>, vector<1x2x1xf32>
    %9 = vector.shape_cast %8 : vector<1x2x1xf32> to vector<2x1xf32>
    %10 = arith.addf %7, %9 : vector<2x1xf32>
    %c0_10 = arith.constant 0 : index
    %c0_11 = arith.constant 0 : index
    %c0_12 = arith.constant 0 : index
    %11 = vector.load %arg6[%c0_10, %c0_11, %c0_12] : memref<1x2x1xf32, #tpu.memory_space<vmem>>, vector<1x2x1xf32>
    %12 = vector.shape_cast %11 : vector<1x2x1xf32> to vector<2x1xf32>
    %13 = vector.shape_cast %10 : vector<2x1xf32> to vector<1x2x1xf32>
    tpu.vector_store %arg6[%c0_10, %c0_11, %c0_12], %13 {strides = array<i32>} : memref<1x2x1xf32, #tpu.memory_space<vmem>>, vector<1x2x1xf32>,
    return
  }
  func.func @transform_0(%arg0: i32, %arg1: memref<4xi32, #tpu.memory_space<smem>>, %arg2: memref<4xi32, #tpu.memory_space<smem>>) -> (i32, i32, i32) {
    %0 = arith.index_cast %arg0 : i32 to index
    %1 = memref.load %arg2[%0] : memref<4xi32, #tpu.memory_space<smem>>
    %c0_i32 = arith.constant 0 : i32
    %c0_i32_0 = arith.constant 0 : i32
    %c0_i32_1 = arith.constant 0 : i32
    return %1, %c0_i32, %c0_i32_0 : i32, i32, i32
  }
  func.func @transform_1(%arg0: i32, %arg1: memref<4xi32, #tpu.memory_space<smem>>, %arg2: memref<4xi32, #tpu.memory_space<smem>>) -> (i32, i32, i32, i32) {
    %0 = arith.index_cast %arg0 : i32 to index
    %1 = memref.load %arg2[%0] : memref<4xi32, #tpu.memory_space<smem>>
    %2 = arith.index_cast %1 : i32 to index
    %3 = memref.load %arg1[%2] : memref<4xi32, #tpu.memory_space<smem>>
    %c0_i32 = arith.constant 0 : i32
    %c0_i32_0 = arith.constant 0 : i32
    %c0_i32_1 = arith.constant 0 : i32
    %c0_i32_2 = arith.constant 0 : i32
    return %3, %c0_i32, %c0_i32_0, %c0_i32_1 : i32, i32, i32, i32
  }
  func.func @transform_2(%arg0: i32, %arg1: memref<4xi32, #tpu.memory_space<smem>>, %arg2: memref<4xi32, #tpu.memory_space<smem>>) -> (i32, i32, i32) {
    %0 = arith.index_cast %arg0 : i32 to index
    %1 = memref.load %arg2[%0] : memref<4xi32, #tpu.memory_space<smem>>
    %2 = arith.index_cast %1 : i32 to index
    %3 = memref.load %arg1[%2] : memref<4xi32, #tpu.memory_space<smem>>
    %c0_i32 = arith.constant 0 : i32
    %c0_i32_0 = arith.constant 0 : i32
    %c0_i32_1 = arith.constant 0 : i32
    return %3, %c0_i32, %c0_i32_0 : i32, i32, i32
  }
  func.func @transform_3(%arg0: i32, %arg1: memref<4xi32, #tpu.memory_space<smem>>, %arg2: memref<4xi32, #tpu.memory_space<smem>>) -> (i32, i32, i32) {
    %0 = arith.index_cast %arg0 : i32 to index
    %1 = memref.load %arg2[%0] : memref<4xi32, #tpu.memory_space<smem>>
    %c0_i32 = arith.constant 0 : i32
    %c0_i32_0 = arith.constant 0 : i32
    %c0_i32_1 = arith.constant 0 : i32
    return %1, %c0_i32, %c0_i32_0 : i32, i32, i32
  }
}

</mosaic_0001>

<bundles_post_ra>
// kernel: tpu_custom_call.1
= control target key start
LH: loop header
LB: loop body
LE: loop exit
PB: predicated region body
PF: predicated region fallthrough
CT: control target
= control target key end

     0   :  { %s723_s0 = inlined_call_operand.vmem [shape: s32[4], index: 0, kind: input, shape index: {}]   ;;  %s724_s2 = inlined_call_operand.vmem [shape: f32[4,8,128], index: 2, kind: input, shape index: {}]   ;;  %s725_s3 = inlined_call_operand.hbm [shape: f32[48,2,8,128], index: 3, kind: input, shape index: {}]   ;;  %s726_s4 = inlined_call_operand.vmem [shape: f32[48,2,1], index: 4, kind: input, shape index: {}]   ;;  %s727_s5 = inlined_call_operand.vmem [shape: f32[4,2,1], index: 5, kind: output, shape index: {}]   ;;  %s728_s1 = inlined_call_operand.vmem [shape: s32[4], index: 1, kind: input, shape index: {}]  }
   0x1   :  { %s10_s20 = sshll.u32 %s723_s0, 4  ;;  %s14_s23 = sshll.u32 %s728_s1, 4  ;;  %s11_s20 = int_to_ptr.vmem [resolvable:$true] %s10_s20  ;;  %s15_s23 = int_to_ptr.vmem [resolvable:$true] %s14_s23 }
   0x2   :  { %s456_s24 = scalar_lea.vmem %s11_s20, 16  ;;  %p461_p1 = scmp.lt.s32.totalorder %s11_s20, %s11_s20 }
   0x3   :  { %p457_p0 = scmp.ne.s32.totalorder %s11_s20, %s456_s24  ;;  %p462_p2 = scmp.lt.s32.totalorder %s456_s24, %s456_s24 }
   0x5   :  { %p463_p3 = por %p462_p2, %p461_p1 }
   0x7   :  { %p464_p4 = pnand %p463_p3, %p457_p0 }
   0x9   :  { %467 = shalt.err (!%p464_p4)  }
   0xa   :  { %s546_s25 = smov [#allocation3]   ;;  %s468_s26 = scalar_lea.vmem %s15_s23, 16 }
   0xb   :  { %13 = dma.vmem_to_smem %s11_s20, 16, %s546_s25, [#allocation2] }
   0xc   :  { %p469_p5 = scmp.ne.s32.totalorder %s15_s23, %s468_s26  ;;  %p473_p6 = scmp.lt.s32.totalorder %s15_s23, %s15_s23 }
   0xd   :  { %p474_p7 = scmp.lt.s32.totalorder %s468_s26, %s468_s26 }
   0xf   :  { %p475_p8 = por %p474_p7, %p473_p6 }
  0x11   :  { %p476_p9 = pnand %p475_p8, %p469_p5 }
  0x13   :  { %479 = shalt.err (!%p476_p9)  }
  0x14   :  { %s547_s0 = smov [#allocation4]  }
  0x15   :  { %17 = dma.vmem_to_smem %s15_s23, 16, %s547_s0, [#allocation2] }
  0x16   :  { %524 = dma.done.wait [#allocation2], 32 }
  0x17   :  { %525 = vsyncadd [#allocation2], 4294967264 }
  0x18   :  { %19 = sfence }
  0x19   :  { %20 = vsyncpa [#allocation6], 0 }
  0x1a   :  { %22 = vsyncpa [#allocation6 + $0x1], 0  ;;  %s587_s1 = smov 0   ;;  %s589_s27 = smov 0  }
  0x1b   :  { %s591_s28 = smov 0   ;;  %s593_s29 = smov 0  }
  0x1c LB: > { %s606_s30 = sadd.s32 1, %s544_s29   ;;  %s609_s6 = sadd.s32 4294967295, %s544_s29   ;;  %s544_s29 = sphi %s593_s29, %s739_s29   ;;  %s540_s28 = sphi %s591_s28, %s738_s28   ;;  %s536_s27 = sphi %s589_s27, %s737_s27   ;;  %s532_s1 = sphi %s587_s1, %s736_s1  }
  0x1d   : > { %s60_s7 = sld [smem:[#allocation4 + %s544_s29]]  ;;  %p74_p10 = scmp.ne.s32.totalorder %s540_s28, %s536_s27 }
  0x1e   : > { %s62_s8 = sld [smem:[#allocation4 + %s606_s30]]  ;;  %p75_p11 = scmp.eq.s32.totalorder %s544_s29, 0 }
  0x1f   : > { %p80_p12 = scmp.ne.s32.totalorder %s536_s27, %s532_s1  ;;  %p81_p13 = scmp.eq.s32.totalorder %s609_s6, 0 }
  0x20   : > { %p618_p0 = por %p75_p11, %p74_p10  ;;  %s171_s11 = sand.u32 1, %s540_s28  }
  0x21   : > { %p622_p1 = por %p81_p13, %p80_p12  ;;  %p419_p2 = scmp.lt.s32.totalorder %s544_s29, 4 }
  0x22   : > { %s67_s14 = sadd.s32 1, %s540_s28  ;;  %s394_s15 = sshll.u32 %s171_s11, 4 }
  0x23   : > { %s731_s10 = scalar_select %p622_p1, 1, 0 }
  0x24   : > { %s61_s12 = sld [smem:[#allocation3 + %s60_s7]]  ;;  %p642_p3 = pnand %p419_p2, %p618_p0 }
  0x25   : > { %s63_s13 = sld [smem:[#allocation3 + %s62_s8]]  ;;  %p397_p5 = scmp.ge.s32.totalorder %s544_s29, 1 }
  0x26   : > { %s405_s16 = scalar_select %p618_p0, [#allocation4], [#allocation7] }
  0x27   : > { %s406_s17 = scalar_select %p618_p0, %s544_s29, 0 }
  0x28   : > { %s741_s16 = smov (!%p419_p2, %s405_s16), [#allocation9]  ;;  %p203_p6 = scmp.lt.s32.totalorder %s544_s29, 5 }
  0x29   : > { %s743_s17 = smov (!%p419_p2, %s406_s17), 0  ;;  %s175_s25 = scalar_lea.vmem [#allocation5], %s394_s15 }
  0x2a   : > { %s176_s20 = sld [smem:[%s741_s16 + %s743_s17]]  ;;  %p659_p7 = pnand %p397_p5, %p203_p6 }
  0x2b   : > { %s64_s18 = ssub.s32 %s61_s12, %s63_s13  ;;  %s184_s26 = sshll.u32 %s175_s25, 4  ;;  %s663_s26 = int_to_ptr.vmem [resolvable:$true] %s184_s26 }
  0x2c   : > { %p65_p4 = scmp.eq.s32.totalorder %s64_s18, 0  ;;  %s670_s29 = scalar_lea.sflag [#allocation6], %s171_s11 }
  0x2d   : > { %s407_s21 = scalar_select %p618_p0, [#allocation3], [#allocation8] }
  0x2e   : > { %s649_s22 = scalar_select %p65_p4, %s540_s28, %s67_s14  }
  0x2f   : > { %s745_s21 = smov (!%p419_p2, %s407_s21), [#allocation10]  ;;  %p482_p9 = pneg %p642_p3 }
  0x30   : > { %s747_s20 = smov (!%p618_p0, %s176_s20), 0  ;;  %s485_s14 = scalar_lea.hbm %s725_s3, 12288 }
  0x31   : > { %s749_s20 = smov (!%p419_p2, %s747_s20), 0 }
  0x32   : > { %s733_s23 = scalar_select %p659_p7, 1, 0 }
  0x33   : > { %s177_s24 = sld [smem:[%s745_s21 + %s749_s20]] }
  0x39   : > { %s404_s0 = sshll.u32 %s177_s24, 8 }
  0x3a   : > { %s668_s8 = scalar_lea.hbm %s725_s3, %s404_s0 }
  0x3b   : > { %s480_s9 = scalar_lea.hbm %s668_s8, 256  ;;  %p486_p12 = scmp.lt.s32.totalorder %s668_s8, %s725_s3 }
  0x3c   : > { %p481_p8 = scmp.ne.s32.totalorder %s668_s8, %s480_s9  ;;  %p487_p13 = scmp.lt.s32.totalorder %s485_s14, %s480_s9 }
  0x3e   : > { %p483_p10 = pnand %p482_p9, %p481_p8  ;;  %p488_p0 = por %p487_p13, %p486_p12 }
  0x40   : > { %p484_p11 = pneg %p483_p10 }
  0x42   : > { %p489_p2 = pnand %p488_p0, %p484_p11 }
  0x44   : > { %492 = shalt.err (!%p489_p2)
}
  0x45   : > { %s493_s11 = scalar_lea.vmem %s663_s26, 256  ;;  %s548_s17 = smov [#allocation5]  }
  0x46   : > { %p494_p4 = scmp.ne.s32.totalorder %s663_s26, %s493_s11  ;;  %s498_s18 = sshll.u32 %s548_s17, 4  ;;  %s499_s18 = int_to_ptr.vmem [resolvable:$false] %s498_s18 }
  0x47   : > { %s500_s20 = scalar_lea.vmem %s499_s18, 512  ;;  %p501_p8 = scmp.lt.s32.totalorder %s663_s26, %s499_s18 }
  0x48   : > { %p496_p5 = pnand %p494_p4, %p482_p9  ;;  %p502_p10 = scmp.lt.s32.totalorder %s500_s20, %s493_s11 }
  0x4a   : > { %p497_p6 = pneg %p496_p5  ;;  %p503_p1 = por %p502_p10, %p501_p8 }
  0x4c   : > { %p504_p7 = pnand %p503_p1, %p497_p6 }
  0x4e   : > { %507 = shalt.err (!%p504_p7)
}
  0x4f   : > { %s549_s21 = smov 128   ;;  %s550_s24 = smov 8  }
  0x50   : > { %418 = dma.hbm_to_vmem [thread:$0]  (!%p642_p3), %s668_s8, 256, %s663_s26, %s670_s29, %s549_s21, %s549_s21, %s550_s24  }
  0x51   : > { %p734_p9 = scmp.ne.s32.totalorder %s733_s23, 0 }
  0x52   : > { %s209_s25 = sand.u32 (!%p734_p9), 1, %s536_s27   ;;  %p735_p11 = scmp.ne.s32.totalorder (!%p734_p9), %s731_s10, 0 }
  0x53   : > { %207 = sbr.rel (%p734_p9) target bundleno = 258 (0x102), region = 32  ;;  %s398_s0 = sshll.u32 (!%p734_p9), %s209_s25, 4 }
  0x54   : > { %s210_s1 = scalar_lea.sflag (!%p734_p9), [#allocation6], %s209_s25  ;;  %s213_s7 = scalar_lea.vmem (!%p734_p9), [#allocation5], %s398_s0 }
  0x58   : > { %527 = dma.done.wait (%p735_p11), %s210_s1, 256  }
  0x59   : > { %529 = vsyncadd (%p735_p11), %s210_s1, 4294967040  ;;  %s247_s9 = sld [smem:[#allocation4 + %s609_s6]]  ;;  %v270_v0 = vld [vmem:[%s213_s7] sm:$0xff]  ;;  %v271_v1 = vld [vmem:[%s213_s7 + $0x8] sm:$0xff]  ;;  %vm288_vm0 = vcmask 1041409   ;;  %vm291_vm1 = vcmask 1041408  }
  0x5a   : > { %s255_s10 = sld [smem:[#allocation4 + %s609_s6]]  ;;  %vm297_vm2 = vcmask 1024  }
  0x5b   : > { %s263_s12 = sld [smem:[#allocation4 + %s609_s6]] }
  0x5f   : > { %p248_p1 = scmp.lt.s32.totalorder %s247_s9, 3 }
  0x60   : > { %s256_s29 = sld [smem:[#allocation3 + %s255_s10]] }
  0x61   : > { %s751_s9 = smov (!%p248_p1, %s247_s9), 3  ;;  %p264_p7 = scmp.lt.s32.totalorder %s263_s12, 3 }
  0x62   : > { %s399_s19 = sshll.u32 %s751_s9, 3 }
  0x63   : > { %s251_s8 = scalar_lea.vmem %s724_s2, %s399_s19  ;;  %s755_s12 = smov (!%p264_p7, %s263_s12), 3 }
  0x64   : > { %v269_v2 = vld [vmem:[%s251_s8] sm:$0xff]  ;;  %s401_s11 = sshll.u32 %s755_s12, 1 }
  0x65   : > { %v272_v3 = vmul.f32 %v270_v0, %v269_v2  ;;  %v273_v4 = vmul.f32 %v271_v1, %v269_v2  ;;  %s267_s20 = scalar_lea.vmem %s727_s5, %s401_s11 }
  0x66   : > { %p257_p3 = scmp.lt.s32.totalorder %s256_s29, 47 }
  0x67   : > { %v274_v5 = vrot.slane %v272_v3, 4  ;;  %v280_v6 = vrot.slane %v273_v4, 4 }
  0x68   : > { %s753_s29 = smov (!%p257_p3, %s256_s29), 47 }
  0x69   : > { %v275_v7 = vadd.f32 %v274_v5, %v272_v3  ;;  %v281_v8 = vadd.f32 %v280_v6, %v273_v4  ;;  %s400_s13 = sshll.u32 %s753_s29, 1 }
  0x6a   : > { %s260_s16 = scalar_lea.vmem %s726_s4, %s400_s13 }
  0x6b   : > { %v276_v9 = vrot.slane %v275_v7, 2  ;;  %v282_v10 = vrot.slane %v281_v8, 2  ;;  %v295_v19 = vld [vmem:[%s260_s16] sm:$0x3] }
  0x6d   : > { %v277_v11 = vadd.f32 %v276_v9, %v275_v7  ;;  %v283_v12 = vadd.f32 %v282_v10, %v281_v8 }
  0x6f   : > { %v278_v13 = vrot.slane %v277_v11, 1  ;;  %v284_v14 = vrot.slane %v283_v12, 1 }
  0x71   : > { %v279_v15 = vadd.f32 %v278_v13, %v277_v11  ;;  %v285_v16 = vadd.f32 %v284_v14, %v283_v12 }
  0x73   : > { %v289_v17 = vsel %vm288_vm0, %v285_v16, %v279_v15 }
  0x74   : > { %v292_v18 = vsel %vm291_vm1, %v289_v17, 0.0 }
  0x75   : > { %293 = vadd.xlane.f32.xlu0 %v292_v18 }
  0xfe   : > { %v294_v20 = vpop.xlane.xlu0 %293 }
  0xff   : > { %v296_v21 = vadd.f32 %v295_v19, %v294_v20 }
 0x101   : > { %298 = vst.msk [vmem:[%s267_s20] sm:$0x3] %vm297_vm2, %v296_v21 }
 0x102 PF: > { %p25_p12 = scmp.ge.s32.totalorder %s606_s30, 6   ;;  %s736_s1 = smov %s536_s27 }
 0x103   : > { %s737_s27 = smov %s540_s28  ;;  %s738_s28 = smov %s649_s22 }
 0x104   : > { %s739_s29 = smov %s606_s30  ;;  %27 = sbr.rel (!%p25_p12) target bundleno = 28 (0x1c), region = 78 }
 0x109   :  { %321 = vsyncpa [#allocation6], 1 }
 0x10a   :  { %323 = vsyncpa [#allocation6 + $0x1], 1 }

</bundles_post_ra>
